<compile_context>
chip_gen: v7x
topology: tpu7x:2x2x1
jax: 0.10.0
libtpu: 0.0.40
codegen_flags: <defaults>
</compile_context>

<pallas_src>
import functools

import jax
import jax.numpy as jnp
from jax import lax
from jax.experimental import pallas as pl
from jax.experimental.pallas import tpu as pltpu

LEAKY_SLOPE = 0.1
BN_EPS = 1e-5


def _plane_geometry(h_in, w_in, stride):
    """Conv output spatial dims and the 1-ring-padded 'output plane' dims."""
    ho = (h_in - 1) // stride + 1
    wo = (w_in - 1) // stride + 1
    return ho, wo, ho + 2, wo + 2           # ho, wo, plane_h, plane_w


def _polyphase_planes(x_nchw, st, wpl, ppl):
    """Zero-pad + polyphase split + flatten, channels-on-sublanes / flattened
    spatial-on-lanes, so every conv tap of the strided 3x3 conv is a contiguous
    lane-slice of a (Cin, rows) slab.  Total size ~= padded input (no 9x im2col)."""
    n, c, h, w = x_nchw.shape
    hq = -(-(h + 2) // st)
    wq = -(-(w + 2) // st)
    assert wpl >= wq
    xp = jnp.pad(x_nchw, ((0, 0), (0, 0), (1, hq * st - h - 1), (1, wq * st - w - 1)))
    # padded row = a*st + s1, padded col = b*st + s2  ->  (s1, s2, N, C, a, b)
    ph = xp.reshape(n, c, hq, st, wq, st).transpose(3, 5, 0, 1, 2, 4)
    ph = jnp.pad(ph, ((0, 0),) * 5 + ((0, wpl - wq),))
    ph = ph.reshape(st, st, n, c, hq * wpl)
    front = wpl + 1
    dmax = (2 // st - 1) * wpl + (2 // st - 1)
    back = max(0, ppl + max(0, dmax) - hq * wpl)
    ph = jnp.pad(ph, ((0, 0),) * 4 + ((front, back),))
    l_ext = front + hq * wpl + back
    return ph.reshape(st * st, n, c, l_ext), front


def residual_cnn_forward(x_nchw, params, stride):
    """ResidualCNN.forward with training-mode BatchNorm statistics (PyTorch default)."""
    st = int(stride)
    n, cin, h, w = x_nchw.shape
    cout = params["w2"].shape[0]
    ho, wo, hpl, wpl = _plane_geometry(h, w, st)
    ppl = hpl * wpl                         # flattened output plane (valid outputs = interior)
    front2 = wpl + 1
    l2 = ppl + 2 * front2

    # ------------------- plain-JAX glue (cheap, O(activation)) -------------------
    xph, front1 = _polyphase_planes(x_nchw.astype(jnp.float32), st, wpl, ppl)
    l1 = xph.shape[3]                       # (st*st, N, Cin, L1) f32

    # Tap-major weight matrices, [out, in] per tap; bf16 for the MXU (f32 accumulation).
    w1_t = jnp.transpose(params["w1"], (2, 3, 0, 1)).reshape(9, cin, cin).astype(jnp.bfloat16)
    wsc_t = jnp.transpose(params["w_sc"], (2, 3, 0, 1)).reshape(9, cout, cin).astype(jnp.bfloat16)
    w2_t = jnp.transpose(params["w2"], (2, 3, 0, 1)).reshape(9, cout, cin).astype(jnp.bfloat16)
    b1 = params["b1"].reshape(cin, 1).astype(jnp.float32)
    # NOTE: cnn2's and the shortcut's biases are per-channel constants added to the
    # pre-BN activation -> exactly cancelled by training-mode BN mean subtraction,
    # so they are dropped.  cnn1's bias is kept.
    gamma = params["gamma"].reshape(cout, 1).astype(jnp.float32)
    beta = params["beta"].reshape(cout, 1).astype(jnp.float32)

    # Interior (valid conv positions) mask of the (hpl, wpl) plane, flattened on lanes.
    ii = jnp.arange(hpl)
    jj = jnp.arange(wpl)
    m2d = ((ii[:, None] >= 1) & (ii[:, None] <= ho) &
           (jj[None, :] >= 1) & (jj[None, :] <= wo)).astype(jnp.float32)
    mask_row = m2d.reshape(1, ppl)

    taps = [(kh, kw) for kh in range(3) for kw in range(3)]

    # ---------------------------------- kernels ----------------------------------
    def main_kernel(xph_ref, w1_ref, wsc_ref, w2_ref, b1_ref, mrow_ref,
                    s_out_ref, psum_ref, pssq_ref, h1p_sc):
        mask = mrow_ref[...]                                 # (1, ppl) 0/1 f32

        # --- cnn1 + shortcut conv: one tap extraction, two f32 accumulators ---
        acc_h1 = jnp.zeros((cin, ppl), jnp.float32)
        acc_sc = jnp.zeros((cout, ppl), jnp.float32)
        for t, (kh, kw) in enumerate(taps):
            phase = (kh % st) * st + (kw % st)
            start = front1 + (kh // st - 1) * wpl + (kw // st - 1)
            xt = xph_ref[phase, 0, :, start:start + ppl].astype(jnp.bfloat16)  # (cin, ppl)
            acc_h1 = acc_h1 + lax.dot_general(
                w1_ref[t], xt, (((1,), (0,)), ((), ())),
                preferred_element_type=jnp.float32)
            acc_sc = acc_sc + lax.dot_general(
                wsc_ref[t], xt, (((1,), (0,)), ((), ())),
                preferred_element_type=jnp.float32)

        # conv1 plane with a zeroed border ring: it acts as cnn2's zero padding.
        h1 = (acc_h1 + b1_ref[...]) * mask                   # (cin, ppl)
        h1p_sc[...] = jnp.zeros((cin, l2), jnp.float32)      # also clears front/back guards
        h1p_sc[:, front2:front2 + ppl] = h1

        # --- cnn2 (stride 1) straight out of the VMEM-resident plane ---
        acc2 = jnp.zeros((cout, ppl), jnp.float32)
        for t, (kh, kw) in enumerate(taps):
            start = front2 + (kh - 1) * wpl + (kw - 1)
            xt = h1p_sc[:, start:start + ppl].astype(jnp.bfloat16)            # (cin, ppl)
            acc2 = acc2 + lax.dot_general(
                w2_ref[t], xt, (((1,), (0,)), ((), ())),
                preferred_element_type=jnp.float32)

        s_val = acc2 + acc_sc                                # residual add (pre-BN)
        s_out_ref[0] = s_val

        # Exact masked per-channel partial sums for training-mode BN statistics.
        masked = s_val * mask
        psum_ref[0] = jnp.sum(masked, axis=1, keepdims=True)
        pssq_ref[0] = jnp.sum(masked * masked, axis=1, keepdims=True)

    def bn_act_kernel(s_ref, scale_ref, shift_ref, y_ref):
        v = s_ref[0] * scale_ref[...] + shift_ref[...]       # fused BN scale/shift
        y_ref[0] = jnp.where(v > 0.0, v, LEAKY_SLOPE * v)    # LeakyReLU(0.1)

    def _const_spec(shape):
        rank = len(shape)
        return pl.BlockSpec(shape, lambda i, _r=rank: (0,) * _r)   # default-arg capture

    vmem_limit = 32 * 1024 * 1024   # well within v5e/v6e (128 MiB) and v7x (64 MiB) VMEM

    # ---- kernel 1: cnn1 + shortcut + cnn2 + residual + BN partial sums (per image) ----
    s_pre, psum, pssq = pl.pallas_call(
        main_kernel,
        out_shape=(jax.ShapeDtypeStruct((n, cout, ppl), jnp.float32),
                   jax.ShapeDtypeStruct((n, cout, 1), jnp.float32),
                   jax.ShapeDtypeStruct((n, cout, 1), jnp.float32)),
        grid_spec=pltpu.PrefetchScalarGridSpec(
            num_scalar_prefetch=0,
            grid=(n,),
            in_specs=[
                pl.BlockSpec((st * st, 1, cin, l1), lambda i: (0, i, 0, 0)),
                _const_spec((9, cin, cin)),
                _const_spec((9, cout, cin)),
                _const_spec((9, cout, cin)),
                _const_spec((cin, 1)),
                _const_spec((1, ppl)),
            ],
            out_specs=[
                pl.BlockSpec((1, cout, ppl), lambda i: (i, 0, 0)),
                pl.BlockSpec((1, cout, 1), lambda i: (i, 0, 0)),
                pl.BlockSpec((1, cout, 1), lambda i: (i, 0, 0)),
            ],
            scratch_shapes=[pltpu.VMEM((cin, l2), jnp.float32)],
        ),
        compiler_params=pltpu.CompilerParams(
            dimension_semantics=("parallel",),
            vmem_limit_bytes=vmem_limit),
        cost_estimate=pl.CostEstimate(
            flops=2 * 9 * n * ppl * cin * (cin + 2 * cout),
            transcendentals=0,
            bytes_accessed=4 * (xph.size + n * cout * (ppl + 2))
                           + 2 * 9 * cin * (cin + 2 * cout)),
    )(xph, w1_t, wsc_t, w2_t, b1, mask_row)

    # ---- O(Cout) glue: fold exact batch statistics into per-channel scale/shift ----
    count = float(n * ho * wo)
    mean = jnp.sum(psum, axis=0) / count                 # (cout, 1)
    var = jnp.sum(pssq, axis=0) / count - mean * mean    # biased variance (PyTorch BN)
    scale = gamma * lax.rsqrt(var + BN_EPS)
    shift = beta - mean * scale

    # ---- kernel 2: BN scale/shift fused with LeakyReLU (per image) ----
    y_planes = pl.pallas_call(
        bn_act_kernel,
        out_shape=jax.ShapeDtypeStruct((n, cout, ppl), jnp.float32),
        grid_spec=pltpu.PrefetchScalarGridSpec(
            num_scalar_prefetch=0,
            grid=(n,),
            in_specs=[
                pl.BlockSpec((1, cout, ppl), lambda i: (i, 0, 0)),
                _const_spec((cout, 1)),
                _const_spec((cout, 1)),
            ],
            out_specs=pl.BlockSpec((1, cout, ppl), lambda i: (i, 0, 0)),
        ),
        compiler_params=pltpu.CompilerParams(
            dimension_semantics=("parallel",),
            vmem_limit_bytes=vmem_limit),
        cost_estimate=pl.CostEstimate(
            flops=3 * n * cout * ppl,
            transcendentals=0,
            bytes_accessed=4 * 2 * n * cout * ppl),
    )(s_pre, scale, shift)

    # Output is already channels-first; drop the 1-pixel plane ring -> NCHW.
    return y_planes.reshape(n, cout, hpl, wpl)[:, :, 1:1 + ho, 1:1 + wo]


def residual_cnn_reference(x, params, stride):
    """Pure-JAX/XLA reference of ResidualCNN.forward (training-mode BN)."""
    def conv(v, wgt, bias, s_):
        out = lax.conv_general_dilated(
            v, wgt, window_strides=(s_, s_), padding=((1, 1), (1, 1)),
            dimension_numbers=("NCHW", "OIHW", "NCHW"),
            precision=lax.Precision.HIGHEST)
        return out + bias.reshape(1, -1, 1, 1)

    residual = conv(x, params["w_sc"], params["b_sc"], stride)
    hid = conv(x, params["w1"], params["b1"], stride)
    hid = conv(hid, params["w2"], params["b2"], 1)
    hid = hid + residual
    mean = jnp.mean(hid, axis=(0, 2, 3), keepdims=True)
    var = jnp.mean((hid - mean) ** 2, axis=(0, 2, 3), keepdims=True)
    normed = (hid - mean) * lax.rsqrt(var + BN_EPS)
    yv = normed * params["gamma"].reshape(1, -1, 1, 1) + params["beta"].reshape(1, -1, 1, 1)
    return jnp.where(yv > 0, yv, LEAKY_SLOPE * yv)


if __name__ == "__main__":
    key = jax.random.PRNGKey(0)
    N, CIN, COUT, H, W, STRIDE = 2, 4, 8, 16, 16, 2      # is_shortcut == True

    ks = jax.random.split(key, 7)
    params = {
        "w1": 0.1 * jax.random.normal(ks[0], (CIN, CIN, 3, 3), jnp.float32),
        "b1": 0.1 * jax.random.normal(ks[1], (CIN,), jnp.float32),
        "w2": 0.1 * jax.random.normal(ks[2], (COUT, CIN, 3, 3), jnp.float32),
        "b2": 0.1 * jax.random.normal(ks[3], (COUT,), jnp.float32),
        "w_sc": 0.1 * jax.random.normal(ks[4], (COUT, CIN, 3, 3), jnp.float32),
        "b_sc": 0.1 * jax.random.normal(ks[5], (COUT,), jnp.float32),
        # BatchNorm2d default init: weight = 1, bias = 0
        "gamma": jnp.ones((COUT,), jnp.float32),
        "beta": jnp.zeros((COUT,), jnp.float32),
    }
    x = jax.random.normal(ks[6], (N, CIN, H, W), jnp.float32)   # NCHW like torch

    fwd = jax.jit(functools.partial(residual_cnn_forward, stride=STRIDE))
    out = jax.block_until_ready(fwd(x, params))
    assert out.shape == (N, COUT, H // STRIDE, W // STRIDE)

    ref = jax.block_until_ready(residual_cnn_reference(x, params, STRIDE))
    max_err = float(jnp.max(jnp.abs(out - ref)))
    # bf16 MXU operands vs f32 reference -> small numeric differences expected.
    assert max_err < 0.1, f"mismatch vs reference: max abs err {max_err}"
    print("KERNEL_OK")
</pallas_src>

<mosaic_0001>
module attributes {stable_mosaic.version = 11 : i64} {
  func.func @main_kernel(%arg0: i32, %arg1: memref<4x1x4x111xf32, #tpu.memory_space<vmem>>, %arg2: memref<9x4x4xbf16, #tpu.memory_space<vmem>>, %arg3: memref<9x8x4xbf16, #tpu.memory_space<vmem>>, %arg4: memref<9x8x4xbf16, #tpu.memory_space<vmem>>, %arg5: memref<4x1xf32, #tpu.memory_space<vmem>>, %arg6: memref<1x100xf32, #tpu.memory_space<vmem>>, %arg7: memref<1x8x100xf32, #tpu.memory_space<vmem>>, %arg8: memref<1x8x1xf32, #tpu.memory_space<vmem>>, %arg9: memref<1x8x1xf32, #tpu.memory_space<vmem>>, %arg10: memref<4x122xf32, #tpu.memory_space<vmem>>) attributes {dimension_semantics = [#tpu.dimension_semantics<parallel>], iteration_bounds = array<i64: 2>, scalar_prefetch = 0 : i64, scratch_operands = 1 : i64, tpu.core_type = #tpu.core_type<tc>, window_params = [{transform_indices = @transform_0, window_bounds = array<i64: 4, 1, 4, 111>}, {pipeline_mode = #tpu.pipeline_mode<synchronous>, transform_indices = @transform_1, window_bounds = array<i64: 9, 4, 4>}, {pipeline_mode = #tpu.pipeline_mode<synchronous>, transform_indices = @transform_2, window_bounds = array<i64: 9, 8, 4>}, {pipeline_mode = #tpu.pipeline_mode<synchronous>, transform_indices = @transform_3, window_bounds = array<i64: 9, 8, 4>}, {pipeline_mode = #tpu.pipeline_mode<synchronous>, transform_indices = @transform_4, window_bounds = array<i64: 4, 1>}, {pipeline_mode = #tpu.pipeline_mode<synchronous>, transform_indices = @transform_5, window_bounds = array<i64: 1, 100>}, {transform_indices = @transform_6, window_bounds = array<i64: 1, 8, 100>}, {transform_indices = @transform_7, window_bounds = array<i64: 1, 8, 1>}, {transform_indices = @transform_8, window_bounds = array<i64: 1, 8, 1>}]} {
    %c0 = arith.constant 0 : index
    %c0_0 = arith.constant 0 : index
    %0 = vector.load %arg6[%c0, %c0_0] : memref<1x100xf32, #tpu.memory_space<vmem>>, vector<1x100xf32>
    %cst = arith.constant 0.000000e+00 : f32
    %1 = vector.broadcast %cst : f32 to vector<4x100xf32>
    %cst_1 = arith.constant 0.000000e+00 : f32
    %2 = vector.broadcast %cst_1 : f32 to vector<8x100xf32>
    %c0_2 = arith.constant 0 : index
    %c0_3 = arith.constant 0 : index
    %c0_4 = arith.constant 0 : index
    %c0_5 = arith.constant 0 : index
    %3 = vector.load %arg1[%c0_2, %c0_3, %c0_4, %c0_5] : memref<4x1x4x111xf32, #tpu.memory_space<vmem>>, vector<1x1x4x100xf32>
    %4 = vector.shape_cast %3 : vector<1x1x4x100xf32> to vector<4x100xf32>
    %5 = arith.truncf %4 : vector<4x100xf32> to vector<4x100xbf16>
    %c0_6 = arith.constant 0 : index
    %c0_7 = arith.constant 0 : index
    %c0_8 = arith.constant 0 : index
    %6 = vector.load %arg2[%c0_6, %c0_7, %c0_8] : memref<9x4x4xbf16, #tpu.memory_space<vmem>>, vector<1x4x4xbf16>
    %7 = vector.shape_cast %6 : vector<1x4x4xbf16> to vector<4x4xbf16>
    %cst_9 = arith.constant dense<0.000000e+00> : vector<4x100xf32>
    %8 = tpu.matmul %7, %5, %cst_9 {dimension_numbers = #tpu.dot_dimension_numbers<[1], [0], [0], [1], [0, 0, 1, 1], [], []>} : vector<4x4xbf16>, vector<4x100xbf16>, vector<4x100xf32> -> vector<4x100xf32>
    %9 = arith.addf %1, %8 : vector<4x100xf32>
    %c0_10 = arith.constant 0 : index
    %c0_11 = arith.constant 0 : index
    %c0_12 = arith.constant 0 : index
    %10 = vector.load %arg3[%c0_10, %c0_11, %c0_12] : memref<9x8x4xbf16, #tpu.memory_space<vmem>>, vector<1x8x4xbf16>
    %11 = vector.shape_cast %10 : vector<1x8x4xbf16> to vector<8x4xbf16>
    %cst_13 = arith.constant dense<0.000000e+00> : vector<8x100xf32>
    %12 = tpu.matmul %11, %5, %cst_13 {dimension_numbers = #tpu.dot_dimension_numbers<[1], [0], [0], [1], [0, 0, 1, 1], [], []>} : vector<8x4xbf16>, vector<4x100xbf16>, vector<8x100xf32> -> vector<8x100xf32>
    %13 = arith.addf %2, %12 : vector<8x100xf32>
    %c1 = arith.constant 1 : index
    %c0_14 = arith.constant 0 : index
    %c0_15 = arith.constant 0 : index
    %c0_16 = arith.constant 0 : index
    %14 = vector.load %arg1[%c1, %c0_14, %c0_15, %c0_16] : memref<4x1x4x111xf32, #tpu.memory_space<vmem>>, vector<1x1x4x100xf32>
    %15 = vector.shape_cast %14 : vector<1x1x4x100xf32> to vector<4x100xf32>
    %16 = arith.truncf %15 : vector<4x100xf32> to vector<4x100xbf16>
    %c1_17 = arith.constant 1 : index
    %c0_18 = arith.constant 0 : index
    %c0_19 = arith.constant 0 : index
    %17 = vector.load %arg2[%c1_17, %c0_18, %c0_19] : memref<9x4x4xbf16, #tpu.memory_space<vmem>>, vector<1x4x4xbf16>
    %18 = vector.shape_cast %17 : vector<1x4x4xbf16> to vector<4x4xbf16>
    %cst_20 = arith.constant dense<0.000000e+00> : vector<4x100xf32>
    %19 = tpu.matmul %18, %16, %cst_20 {dimension_numbers = #tpu.dot_dimension_numbers<[1], [0], [0], [1], [0, 0, 1, 1], [], []>} : vector<4x4xbf16>, vector<4x100xbf16>, vector<4x100xf32> -> vector<4x100xf32>
    %20 = arith.addf %9, %19 : vector<4x100xf32>
    %c1_21 = arith.constant 1 : index
    %c0_22 = arith.constant 0 : index
    %c0_23 = arith.constant 0 : index
    %21 = vector.load %arg3[%c1_21, %c0_22, %c0_23] : memref<9x8x4xbf16, #tpu.memory_space<vmem>>, vector<1x8x4xbf16>
    %22 = vector.shape_cast %21 : vector<1x8x4xbf16> to vector<8x4xbf16>
    %cst_24 = arith.constant dense<0.000000e+00> : vector<8x100xf32>
    %23 = tpu.matmul %22, %16, %cst_24 {dimension_numbers = #tpu.dot_dimension_numbers<[1], [0], [0], [1], [0, 0, 1, 1], [], []>} : vector<8x4xbf16>, vector<4x100xbf16>, vector<8x100xf32> -> vector<8x100xf32>
    %24 = arith.addf %13, %23 : vector<8x100xf32>
    %c0_25 = arith.constant 0 : index
    %c0_26 = arith.constant 0 : index
    %c0_27 = arith.constant 0 : index
    %c1_28 = arith.constant 1 : index
    %25 = vector.load %arg1[%c0_25, %c0_26, %c0_27, %c1_28] : memref<4x1x4x111xf32, #tpu.memory_space<vmem>>, vector<1x1x4x100xf32>
    %26 = vector.shape_cast %25 : vector<1x1x4x100xf32> to vector<4x100xf32>
    %27 = arith.truncf %26 : vector<4x100xf32> to vector<4x100xbf16>
    %c2 = arith.constant 2 : index
    %c0_29 = arith.constant 0 : index
    %c0_30 = arith.constant 0 : index
    %28 = vector.load %arg2[%c2, %c0_29, %c0_30] : memref<9x4x4xbf16, #tpu.memory_space<vmem>>, vector<1x4x4xbf16>
    %29 = vector.shape_cast %28 : vector<1x4x4xbf16> to vector<4x4xbf16>
    %cst_31 = arith.constant dense<0.000000e+00> : vector<4x100xf32>
    %30 = tpu.matmul %29, %27, %cst_31 {dimension_numbers = #tpu.dot_dimension_numbers<[1], [0], [0], [1], [0, 0, 1, 1], [], []>} : vector<4x4xbf16>, vector<4x100xbf16>, vector<4x100xf32> -> vector<4x100xf32>
    %31 = arith.addf %20, %30 : vector<4x100xf32>
    %c2_32 = arith.constant 2 : index
    %c0_33 = arith.constant 0 : index
    %c0_34 = arith.constant 0 : index
    %32 = vector.load %arg3[%c2_32, %c0_33, %c0_34] : memref<9x8x4xbf16, #tpu.memory_space<vmem>>, vector<1x8x4xbf16>
    %33 = vector.shape_cast %32 : vector<1x8x4xbf16> to vector<8x4xbf16>
    %cst_35 = arith.constant dense<0.000000e+00> : vector<8x100xf32>
    %34 = tpu.matmul %33, %27, %cst_35 {dimension_numbers = #tpu.dot_dimension_numbers<[1], [0], [0], [1], [0, 0, 1, 1], [], []>} : vector<8x4xbf16>, vector<4x100xbf16>, vector<8x100xf32> -> vector<8x100xf32>
    %35 = arith.addf %24, %34 : vector<8x100xf32>
    %c2_36 = arith.constant 2 : index
    %c0_37 = arith.constant 0 : index
    %c0_38 = arith.constant 0 : index
    %c0_39 = arith.constant 0 : index
    %36 = vector.load %arg1[%c2_36, %c0_37, %c0_38, %c0_39] : memref<4x1x4x111xf32, #tpu.memory_space<vmem>>, vector<1x1x4x100xf32>
    %37 = vector.shape_cast %36 : vector<1x1x4x100xf32> to vector<4x100xf32>
    %38 = arith.truncf %37 : vector<4x100xf32> to vector<4x100xbf16>
    %c3 = arith.constant 3 : index
    %c0_40 = arith.constant 0 : index
    %c0_41 = arith.constant 0 : index
    %39 = vector.load %arg2[%c3, %c0_40, %c0_41] : memref<9x4x4xbf16, #tpu.memory_space<vmem>>, vector<1x4x4xbf16>
    %40 = vector.shape_cast %39 : vector<1x4x4xbf16> to vector<4x4xbf16>
    %cst_42 = arith.constant dense<0.000000e+00> : vector<4x100xf32>
    %41 = tpu.matmul %40, %38, %cst_42 {dimension_numbers = #tpu.dot_dimension_numbers<[1], [0], [0], [1], [0, 0, 1, 1], [], []>} : vector<4x4xbf16>, vector<4x100xbf16>, vector<4x100xf32> -> vector<4x100xf32>
    %42 = arith.addf %31, %41 : vector<4x100xf32>
    %c3_43 = arith.constant 3 : index
    %c0_44 = arith.constant 0 : index
    %c0_45 = arith.constant 0 : index
    %43 = vector.load %arg3[%c3_43, %c0_44, %c0_45] : memref<9x8x4xbf16, #tpu.memory_space<vmem>>, vector<1x8x4xbf16>
    %44 = vector.shape_cast %43 : vector<1x8x4xbf16> to vector<8x4xbf16>
    %cst_46 = arith.constant dense<0.000000e+00> : vector<8x100xf32>
    %45 = tpu.matmul %44, %38, %cst_46 {dimension_numbers = #tpu.dot_dimension_numbers<[1], [0], [0], [1], [0, 0, 1, 1], [], []>} : vector<8x4xbf16>, vector<4x100xbf16>, vector<8x100xf32> -> vector<8x100xf32>
    %46 = arith.addf %35, %45 : vector<8x100xf32>
    %c3_47 = arith.constant 3 : index
    %c0_48 = arith.constant 0 : index
    %c0_49 = arith.constant 0 : index
    %c0_50 = arith.constant 0 : index
    %47 = vector.load %arg1[%c3_47, %c0_48, %c0_49, %c0_50] : memref<4x1x4x111xf32, #tpu.memory_space<vmem>>, vector<1x1x4x100xf32>
    %48 = vector.shape_cast %47 : vector<1x1x4x100xf32> to vector<4x100xf32>
    %49 = arith.truncf %48 : vector<4x100xf32> to vector<4x100xbf16>
    %c4 = arith.constant 4 : index
    %c0_51 = arith.constant 0 : index
    %c0_52 = arith.constant 0 : index
    %50 = vector.load %arg2[%c4, %c0_51, %c0_52] : memref<9x4x4xbf16, #tpu.memory_space<vmem>>, vector<1x4x4xbf16>
    %51 = vector.shape_cast %50 : vector<1x4x4xbf16> to vector<4x4xbf16>
    %cst_53 = arith.constant dense<0.000000e+00> : vector<4x100xf32>
    %52 = tpu.matmul %51, %49, %cst_53 {dimension_numbers = #tpu.dot_dimension_numbers<[1], [0], [0], [1], [0, 0, 1, 1], [], []>} : vector<4x4xbf16>, vector<4x100xbf16>, vector<4x100xf32> -> vector<4x100xf32>
    %53 = arith.addf %42, %52 : vector<4x100xf32>
    %c4_54 = arith.constant 4 : index
    %c0_55 = arith.constant 0 : index
    %c0_56 = arith.constant 0 : index
    %54 = vector.load %arg3[%c4_54, %c0_55, %c0_56] : memref<9x8x4xbf16, #tpu.memory_space<vmem>>, vector<1x8x4xbf16>
    %55 = vector.shape_cast %54 : vector<1x8x4xbf16> to vector<8x4xbf16>
    %cst_57 = arith.constant dense<0.000000e+00> : vector<8x100xf32>
    %56 = tpu.matmul %55, %49, %cst_57 {dimension_numbers = #tpu.dot_dimension_numbers<[1], [0], [0], [1], [0, 0, 1, 1], [], []>} : vector<8x4xbf16>, vector<4x100xbf16>, vector<8x100xf32> -> vector<8x100xf32>
    %57 = arith.addf %46, %56 : vector<8x100xf32>
    %c2_58 = arith.constant 2 : index
    %c0_59 = arith.constant 0 : index
    %c0_60 = arith.constant 0 : index
    %c1_61 = arith.constant 1 : index
    %58 = vector.load %arg1[%c2_58, %c0_59, %c0_60, %c1_61] : memref<4x1x4x111xf32, #tpu.memory_space<vmem>>, vector<1x1x4x100xf32>
    %59 = vector.shape_cast %58 : vector<1x1x4x100xf32> to vector<4x100xf32>
    %60 = arith.truncf %59 : vector<4x100xf32> to vector<4x100xbf16>
    %c5 = arith.constant 5 : index
    %c0_62 = arith.constant 0 : index
    %c0_63 = arith.constant 0 : index
    %61 = vector.load %arg2[%c5, %c0_62, %c0_63] : memref<9x4x4xbf16, #tpu.memory_space<vmem>>, vector<1x4x4xbf16>
    %62 = vector.shape_cast %61 : vector<1x4x4xbf16> to vector<4x4xbf16>
    %cst_64 = arith.constant dense<0.000000e+00> : vector<4x100xf32>
    %63 = tpu.matmul %62, %60, %cst_64 {dimension_numbers = #tpu.dot_dimension_numbers<[1], [0], [0], [1], [0, 0, 1, 1], [], []>} : vector<4x4xbf16>, vector<4x100xbf16>, vector<4x100xf32> -> vector<4x100xf32>
    %64 = arith.addf %53, %63 : vector<4x100xf32>
    %c5_65 = arith.constant 5 : index
    %c0_66 = arith.constant 0 : index
    %c0_67 = arith.constant 0 : index
    %65 = vector.load %arg3[%c5_65, %c0_66, %c0_67] : memref<9x8x4xbf16, #tpu.memory_space<vmem>>, vector<1x8x4xbf16>
    %66 = vector.shape_cast %65 : vector<1x8x4xbf16> to vector<8x4xbf16>
    %cst_68 = arith.constant dense<0.000000e+00> : vector<8x100xf32>
    %67 = tpu.matmul %66, %60, %cst_68 {dimension_numbers = #tpu.dot_dimension_numbers<[1], [0], [0], [1], [0, 0, 1, 1], [], []>} : vector<8x4xbf16>, vector<4x100xbf16>, vector<8x100xf32> -> vector<8x100xf32>
    %68 = arith.addf %57, %67 : vector<8x100xf32>
    %c0_69 = arith.constant 0 : index
    %c0_70 = arith.constant 0 : index
    %c0_71 = arith.constant 0 : index
    %c10 = arith.constant 10 : index
    %69 = vector.load %arg1[%c0_69, %c0_70, %c0_71, %c10] : memref<4x1x4x111xf32, #tpu.memory_space<vmem>>, vector<1x1x4x100xf32>
    %70 = vector.shape_cast %69 : vector<1x1x4x100xf32> to vector<4x100xf32>
    %71 = arith.truncf %70 : vector<4x100xf32> to vector<4x100xbf16>
    %c6 = arith.constant 6 : index
    %c0_72 = arith.constant 0 : index
    %c0_73 = arith.constant 0 : index
    %72 = vector.load %arg2[%c6, %c0_72, %c0_73] : memref<9x4x4xbf16, #tpu.memory_space<vmem>>, vector<1x4x4xbf16>
    %73 = vector.shape_cast %72 : vector<1x4x4xbf16> to vector<4x4xbf16>
    %cst_74 = arith.constant dense<0.000000e+00> : vector<4x100xf32>
    %74 = tpu.matmul %73, %71, %cst_74 {dimension_numbers = #tpu.dot_dimension_numbers<[1], [0], [0], [1], [0, 0, 1, 1], [], []>} : vector<4x4xbf16>, vector<4x100xbf16>, vector<4x100xf32> -> vector<4x100xf32>
    %75 = arith.addf %64, %74 : vector<4x100xf32>
    %c6_75 = arith.constant 6 : index
    %c0_76 = arith.constant 0 : index
    %c0_77 = arith.constant 0 : index
    %76 = vector.load %arg3[%c6_75, %c0_76, %c0_77] : memref<9x8x4xbf16, #tpu.memory_space<vmem>>, vector<1x8x4xbf16>
    %77 = vector.shape_cast %76 : vector<1x8x4xbf16> to vector<8x4xbf16>
    %cst_78 = arith.constant dense<0.000000e+00> : vector<8x100xf32>
    %78 = tpu.matmul %77, %71, %cst_78 {dimension_numbers = #tpu.dot_dimension_numbers<[1], [0], [0], [1], [0, 0, 1, 1], [], []>} : vector<8x4xbf16>, vector<4x100xbf16>, vector<8x100xf32> -> vector<8x100xf32>
    %79 = arith.addf %68, %78 : vector<8x100xf32>
    %c1_79 = arith.constant 1 : index
    %c0_80 = arith.constant 0 : index
    %c0_81 = arith.constant 0 : index
    %c10_82 = arith.constant 10 : index
    %80 = vector.load %arg1[%c1_79, %c0_80, %c0_81, %c10_82] : memref<4x1x4x111xf32, #tpu.memory_space<vmem>>, vector<1x1x4x100xf32>
    %81 = vector.shape_cast %80 : vector<1x1x4x100xf32> to vector<4x100xf32>
    %82 = arith.truncf %81 : vector<4x100xf32> to vector<4x100xbf16>
    %c7 = arith.constant 7 : index
    %c0_83 = arith.constant 0 : index
    %c0_84 = arith.constant 0 : index
    %83 = vector.load %arg2[%c7, %c0_83, %c0_84] : memref<9x4x4xbf16, #tpu.memory_space<vmem>>, vector<1x4x4xbf16>
    %84 = vector.shape_cast %83 : vector<1x4x4xbf16> to vector<4x4xbf16>
    %cst_85 = arith.constant dense<0.000000e+00> : vector<4x100xf32>
    %85 = tpu.matmul %84, %82, %cst_85 {dimension_numbers = #tpu.dot_dimension_numbers<[1], [0], [0], [1], [0, 0, 1, 1], [], []>} : vector<4x4xbf16>, vector<4x100xbf16>, vector<4x100xf32> -> vector<4x100xf32>
    %86 = arith.addf %75, %85 : vector<4x100xf32>
    %c7_86 = arith.constant 7 : index
    %c0_87 = arith.constant 0 : index
    %c0_88 = arith.constant 0 : index
    %87 = vector.load %arg3[%c7_86, %c0_87, %c0_88] : memref<9x8x4xbf16, #tpu.memory_space<vmem>>, vector<1x8x4xbf16>
    %88 = vector.shape_cast %87 : vector<1x8x4xbf16> to vector<8x4xbf16>
    %cst_89 = arith.constant dense<0.000000e+00> : vector<8x100xf32>
    %89 = tpu.matmul %88, %82, %cst_89 {dimension_numbers = #tpu.dot_dimension_numbers<[1], [0], [0], [1], [0, 0, 1, 1], [], []>} : vector<8x4xbf16>, vector<4x100xbf16>, vector<8x100xf32> -> vector<8x100xf32>
    %90 = arith.addf %79, %89 : vector<8x100xf32>
    %c0_90 = arith.constant 0 : index
    %c0_91 = arith.constant 0 : index
    %c0_92 = arith.constant 0 : index
    %c11 = arith.constant 11 : index
    %91 = vector.load %arg1[%c0_90, %c0_91, %c0_92, %c11] : memref<4x1x4x111xf32, #tpu.memory_space<vmem>>, vector<1x1x4x100xf32>
    %92 = vector.shape_cast %91 : vector<1x1x4x100xf32> to vector<4x100xf32>
    %93 = arith.truncf %92 : vector<4x100xf32> to vector<4x100xbf16>
    %c8 = arith.constant 8 : index
    %c0_93 = arith.constant 0 : index
    %c0_94 = arith.constant 0 : index
    %94 = vector.load %arg2[%c8, %c0_93, %c0_94] : memref<9x4x4xbf16, #tpu.memory_space<vmem>>, vector<1x4x4xbf16>
    %95 = vector.shape_cast %94 : vector<1x4x4xbf16> to vector<4x4xbf16>
    %cst_95 = arith.constant dense<0.000000e+00> : vector<4x100xf32>
    %96 = tpu.matmul %95, %93, %cst_95 {dimension_numbers = #tpu.dot_dimension_numbers<[1], [0], [0], [1], [0, 0, 1, 1], [], []>} : vector<4x4xbf16>, vector<4x100xbf16>, vector<4x100xf32> -> vector<4x100xf32>
    %97 = arith.addf %86, %96 : vector<4x100xf32>
    %c8_96 = arith.constant 8 : index
    %c0_97 = arith.constant 0 : index
    %c0_98 = arith.constant 0 : index
    %98 = vector.load %arg3[%c8_96, %c0_97, %c0_98] : memref<9x8x4xbf16, #tpu.memory_space<vmem>>, vector<1x8x4xbf16>
    %99 = vector.shape_cast %98 : vector<1x8x4xbf16> to vector<8x4xbf16>
    %cst_99 = arith.constant dense<0.000000e+00> : vector<8x100xf32>
    %100 = tpu.matmul %99, %93, %cst_99 {dimension_numbers = #tpu.dot_dimension_numbers<[1], [0], [0], [1], [0, 0, 1, 1], [], []>} : vector<8x4xbf16>, vector<4x100xbf16>, vector<8x100xf32> -> vector<8x100xf32>
    %101 = arith.addf %90, %100 : vector<8x100xf32>
    %c0_100 = arith.constant 0 : index
    %c0_101 = arith.constant 0 : index
    %102 = vector.load %arg5[%c0_100, %c0_101] : memref<4x1xf32, #tpu.memory_space<vmem>>, vector<4x1xf32>
    %103 = vector.broadcast %102 : vector<4x1xf32> to vector<4x100xf32>
    %104 = arith.addf %97, %103 : vector<4x100xf32>
    %105 = vector.broadcast %0 : vector<1x100xf32> to vector<4x100xf32>
    %106 = arith.mulf %104, %105 : vector<4x100xf32>
    %cst_102 = arith.constant 0.000000e+00 : f32
    %107 = vector.broadcast %cst_102 : f32 to vector<4x122xf32>
    %c0_103 = arith.constant 0 : index
    %c0_104 = arith.constant 0 : index
    %108 = vector.load %arg10[%c0_103, %c0_104] : memref<4x122xf32, #tpu.memory_space<vmem>>, vector<4x122xf32>
    tpu.vector_store %arg10[%c0_103, %c0_104], %107 {strides = array<i32>} : memref<4x122xf32, #tpu.memory_space<vmem>>, vector<4x122xf32>,
    %c0_105 = arith.constant 0 : index
    %c11_106 = arith.constant 11 : index
    %109 = vector.load %arg10[%c0_105, %c11_106] : memref<4x122xf32, #tpu.memory_space<vmem>>, vector<4x100xf32>
    tpu.vector_store %arg10[%c0_105, %c11_106], %106 {strides = array<i32>} : memref<4x122xf32, #tpu.memory_space<vmem>>, vector<4x100xf32>,
    %cst_107 = arith.constant 0.000000e+00 : f32
    %110 = vector.broadcast %cst_107 : f32 to vector<8x100xf32>
    %c0_108 = arith.constant 0 : index
    %c0_109 = arith.constant 0 : index
    %111 = vector.load %arg10[%c0_108, %c0_109] : memref<4x122xf32, #tpu.memory_space<vmem>>, vector<4x100xf32>
    %112 = arith.truncf %111 : vector<4x100xf32> to vector<4x100xbf16>
    %c0_110 = arith.constant 0 : index
    %c0_111 = arith.constant 0 : index
    %c0_112 = arith.constant 0 : index
    %113 = vector.load %arg4[%c0_110, %c0_111, %c0_112] : memref<9x8x4xbf16, #tpu.memory_space<vmem>>, vector<1x8x4xbf16>
    %114 = vector.shape_cast %113 : vector<1x8x4xbf16> to vector<8x4xbf16>
    %cst_113 = arith.constant dense<0.000000e+00> : vector<8x100xf32>
    %115 = tpu.matmul %114, %112, %cst_113 {dimension_numbers = #tpu.dot_dimension_numbers<[1], [0], [0], [1], [0, 0, 1, 1], [], []>} : vector<8x4xbf16>, vector<4x100xbf16>, vector<8x100xf32> -> vector<8x100xf32>
    %116 = arith.addf %110, %115 : vector<8x100xf32>
    %c0_114 = arith.constant 0 : index
    %c1_115 = arith.constant 1 : index
    %117 = vector.load %arg10[%c0_114, %c1_115] : memref<4x122xf32, #tpu.memory_space<vmem>>, vector<4x100xf32>
    %118 = arith.truncf %117 : vector<4x100xf32> to vector<4x100xbf16>
    %c1_116 = arith.constant 1 : index
    %c0_117 = arith.constant 0 : index
    %c0_118 = arith.constant 0 : index
    %119 = vector.load %arg4[%c1_116, %c0_117, %c0_118] : memref<9x8x4xbf16, #tpu.memory_space<vmem>>, vector<1x8x4xbf16>
    %120 = vector.shape_cast %119 : vector<1x8x4xbf16> to vector<8x4xbf16>
    %cst_119 = arith.constant dense<0.000000e+00> : vector<8x100xf32>
    %121 = tpu.matmul %120, %118, %cst_119 {dimension_numbers = #tpu.dot_dimension_numbers<[1], [0], [0], [1], [0, 0, 1, 1], [], []>} : vector<8x4xbf16>, vector<4x100xbf16>, vector<8x100xf32> -> vector<8x100xf32>
    %122 = arith.addf %116, %121 : vector<8x100xf32>
    %c0_120 = arith.constant 0 : index
    %c2_121 = arith.constant 2 : index
    %123 = vector.load %arg10[%c0_120, %c2_121] : memref<4x122xf32, #tpu.memory_space<vmem>>, vector<4x100xf32>
    %124 = arith.truncf %123 : vector<4x100xf32> to vector<4x100xbf16>
    %c2_122 = arith.constant 2 : index
    %c0_123 = arith.constant 0 : index
    %c0_124 = arith.constant 0 : index
    %125 = vector.load %arg4[%c2_122, %c0_123, %c0_124] : memref<9x8x4xbf16, #tpu.memory_space<vmem>>, vector<1x8x4xbf16>
    %126 = vector.shape_cast %125 : vector<1x8x4xbf16> to vector<8x4xbf16>
    %cst_125 = arith.constant dense<0.000000e+00> : vector<8x100xf32>
    %127 = tpu.matmul %126, %124, %cst_125 {dimension_numbers = #tpu.dot_dimension_numbers<[1], [0], [0], [1], [0, 0, 1, 1], [], []>} : vector<8x4xbf16>, vector<4x100xbf16>, vector<8x100xf32> -> vector<8x100xf32>
    %128 = arith.addf %122, %127 : vector<8x100xf32>
    %c0_126 = arith.constant 0 : index
    %c10_127 = arith.constant 10 : index
    %129 = vector.load %arg10[%c0_126, %c10_127] : memref<4x122xf32, #tpu.memory_space<vmem>>, vector<4x100xf32>
    %130 = arith.truncf %129 : vector<4x100xf32> to vector<4x100xbf16>
    %c3_128 = arith.constant 3 : index
    %c0_129 = arith.constant 0 : index
    %c0_130 = arith.constant 0 : index
    %131 = vector.load %arg4[%c3_128, %c0_129, %c0_130] : memref<9x8x4xbf16, #tpu.memory_space<vmem>>, vector<1x8x4xbf16>
    %132 = vector.shape_cast %131 : vector<1x8x4xbf16> to vector<8x4xbf16>
    %cst_131 = arith.constant dense<0.000000e+00> : vector<8x100xf32>
    %133 = tpu.matmul %132, %130, %cst_131 {dimension_numbers = #tpu.dot_dimension_numbers<[1], [0], [0], [1], [0, 0, 1, 1], [], []>} : vector<8x4xbf16>, vector<4x100xbf16>, vector<8x100xf32> -> vector<8x100xf32>
    %134 = arith.addf %128, %133 : vector<8x100xf32>
    %c0_132 = arith.constant 0 : index
    %c11_133 = arith.constant 11 : index
    %135 = vector.load %arg10[%c0_132, %c11_133] : memref<4x122xf32, #tpu.memory_space<vmem>>, vector<4x100xf32>
    %136 = arith.truncf %135 : vector<4x100xf32> to vector<4x100xbf16>
    %c4_134 = arith.constant 4 : index
    %c0_135 = arith.constant 0 : index
    %c0_136 = arith.constant 0 : index
    %137 = vector.load %arg4[%c4_134, %c0_135, %c0_136] : memref<9x8x4xbf16, #tpu.memory_space<vmem>>, vector<1x8x4xbf16>
    %138 = vector.shape_cast %137 : vector<1x8x4xbf16> to vector<8x4xbf16>
    %cst_137 = arith.constant dense<0.000000e+00> : vector<8x100xf32>
    %139 = tpu.matmul %138, %136, %cst_137 {dimension_numbers = #tpu.dot_dimension_numbers<[1], [0], [0], [1], [0, 0, 1, 1], [], []>} : vector<8x4xbf16>, vector<4x100xbf16>, vector<8x100xf32> -> vector<8x100xf32>
    %140 = arith.addf %134, %139 : vector<8x100xf32>
    %c0_138 = arith.constant 0 : index
    %c12 = arith.constant 12 : index
    %141 = vector.load %arg10[%c0_138, %c12] : memref<4x122xf32, #tpu.memory_space<vmem>>, vector<4x100xf32>
    %142 = arith.truncf %141 : vector<4x100xf32> to vector<4x100xbf16>
    %c5_139 = arith.constant 5 : index
    %c0_140 = arith.constant 0 : index
    %c0_141 = arith.constant 0 : index
    %143 = vector.load %arg4[%c5_139, %c0_140, %c0_141] : memref<9x8x4xbf16, #tpu.memory_space<vmem>>, vector<1x8x4xbf16>
    %144 = vector.shape_cast %143 : vector<1x8x4xbf16> to vector<8x4xbf16>
    %cst_142 = arith.constant dense<0.000000e+00> : vector<8x100xf32>
    %145 = tpu.matmul %144, %142, %cst_142 {dimension_numbers = #tpu.dot_dimension_numbers<[1], [0], [0], [1], [0, 0, 1, 1], [], []>} : vector<8x4xbf16>, vector<4x100xbf16>, vector<8x100xf32> -> vector<8x100xf32>
    %146 = arith.addf %140, %145 : vector<8x100xf32>
    %c0_143 = arith.constant 0 : index
    %c20 = arith.constant 20 : index
    %147 = vector.load %arg10[%c0_143, %c20] : memref<4x122xf32, #tpu.memory_space<vmem>>, vector<4x100xf32>
    %148 = arith.truncf %147 : vector<4x100xf32> to vector<4x100xbf16>
    %c6_144 = arith.constant 6 : index
    %c0_145 = arith.constant 0 : index
    %c0_146 = arith.constant 0 : index
    %149 = vector.load %arg4[%c6_144, %c0_145, %c0_146] : memref<9x8x4xbf16, #tpu.memory_space<vmem>>, vector<1x8x4xbf16>
    %150 = vector.shape_cast %149 : vector<1x8x4xbf16> to vector<8x4xbf16>
    %cst_147 = arith.constant dense<0.000000e+00> : vector<8x100xf32>
    %151 = tpu.matmul %150, %148, %cst_147 {dimension_numbers = #tpu.dot_dimension_numbers<[1], [0], [0], [1], [0, 0, 1, 1], [], []>} : vector<8x4xbf16>, vector<4x100xbf16>, vector<8x100xf32> -> vector<8x100xf32>
    %152 = arith.addf %146, %151 : vector<8x100xf32>
    %c0_148 = arith.constant 0 : index
    %c21 = arith.constant 21 : index
    %153 = vector.load %arg10[%c0_148, %c21] : memref<4x122xf32, #tpu.memory_space<vmem>>, vector<4x100xf32>
    %154 = arith.truncf %153 : vector<4x100xf32> to vector<4x100xbf16>
    %c7_149 = arith.constant 7 : index
    %c0_150 = arith.constant 0 : index
    %c0_151 = arith.constant 0 : index
    %155 = vector.load %arg4[%c7_149, %c0_150, %c0_151] : memref<9x8x4xbf16, #tpu.memory_space<vmem>>, vector<1x8x4xbf16>
    %156 = vector.shape_cast %155 : vector<1x8x4xbf16> to vector<8x4xbf16>
    %cst_152 = arith.constant dense<0.000000e+00> : vector<8x100xf32>
    %157 = tpu.matmul %156, %154, %cst_152 {dimension_numbers = #tpu.dot_dimension_numbers<[1], [0], [0], [1], [0, 0, 1, 1], [], []>} : vector<8x4xbf16>, vector<4x100xbf16>, vector<8x100xf32> -> vector<8x100xf32>
    %158 = arith.addf %152, %157 : vector<8x100xf32>
    %c0_153 = arith.constant 0 : index
    %c22 = arith.constant 22 : index
    %159 = vector.load %arg10[%c0_153, %c22] : memref<4x122xf32, #tpu.memory_space<vmem>>, vector<4x100xf32>
    %160 = arith.truncf %159 : vector<4x100xf32> to vector<4x100xbf16>
    %c8_154 = arith.constant 8 : index
    %c0_155 = arith.constant 0 : index
    %c0_156 = arith.constant 0 : index
    %161 = vector.load %arg4[%c8_154, %c0_155, %c0_156] : memref<9x8x4xbf16, #tpu.memory_space<vmem>>, vector<1x8x4xbf16>
    %162 = vector.shape_cast %161 : vector<1x8x4xbf16> to vector<8x4xbf16>
    %cst_157 = arith.constant dense<0.000000e+00> : vector<8x100xf32>
    %163 = tpu.matmul %162, %160, %cst_157 {dimension_numbers = #tpu.dot_dimension_numbers<[1], [0], [0], [1], [0, 0, 1, 1], [], []>} : vector<8x4xbf16>, vector<4x100xbf16>, vector<8x100xf32> -> vector<8x100xf32>
    %164 = arith.addf %158, %163 : vector<8x100xf32>
    %165 = arith.addf %164, %101 : vector<8x100xf32>
    %c0_158 = arith.constant 0 : index
    %c0_159 = arith.constant 0 : index
    %c0_160 = arith.constant 0 : index
    %166 = vector.load %arg7[%c0_158, %c0_159, %c0_160] : memref<1x8x100xf32, #tpu.memory_space<vmem>>, vector<1x8x100xf32>
    %167 = vector.shape_cast %166 : vector<1x8x100xf32> to vector<8x100xf32>
    %168 = vector.shape_cast %165 : vector<8x100xf32> to vector<1x8x100xf32>
    tpu.vector_store %arg7[%c0_158, %c0_159, %c0_160], %168 {strides = array<i32>} : memref<1x8x100xf32, #tpu.memory_space<vmem>>, vector<1x8x100xf32>,
    %169 = vector.broadcast %0 : vector<1x100xf32> to vector<8x100xf32>
    %170 = arith.mulf %165, %169 : vector<8x100xf32>
    %cst_161 = arith.constant dense<0.000000e+00> : vector<8xf32>
    %171 = vector.multi_reduction <add>, %170, %cst_161 [1] : vector<8x100xf32> to vector<8xf32>
    %172 = vector.shape_cast %171 : vector<8xf32> to vector<8x1xf32>
    %c0_162 = arith.constant 0 : index
    %c0_163 = arith.constant 0 : index
    %c0_164 = arith.constant 0 : index
    %173 = vector.load %arg8[%c0_162, %c0_163, %c0_164] : memref<1x8x1xf32, #tpu.memory_space<vmem>>, vector<1x8x1xf32>
    %174 = vector.shape_cast %173 : vector<1x8x1xf32> to vector<8x1xf32>
    %175 = vector.shape_cast %172 : vector<8x1xf32> to vector<1x8x1xf32>
    tpu.vector_store %arg8[%c0_162, %c0_163, %c0_164], %175 {strides = array<i32>} : memref<1x8x1xf32, #tpu.memory_space<vmem>>, vector<1x8x1xf32>,
    %176 = arith.mulf %170, %170 : vector<8x100xf32>
    %cst_165 = arith.constant dense<0.000000e+00> : vector<8xf32>
    %177 = vector.multi_reduction <add>, %176, %cst_165 [1] : vector<8x100xf32> to vector<8xf32>
    %178 = vector.shape_cast %177 : vector<8xf32> to vector<8x1xf32>
    %c0_166 = arith.constant 0 : index
    %c0_167 = arith.constant 0 : index
    %c0_168 = arith.constant 0 : index
    %179 = vector.load %arg9[%c0_166, %c0_167, %c0_168] : memref<1x8x1xf32, #tpu.memory_space<vmem>>, vector<1x8x1xf32>
    %180 = vector.shape_cast %179 : vector<1x8x1xf32> to vector<8x1xf32>
    %181 = vector.shape_cast %178 : vector<8x1xf32> to vector<1x8x1xf32>
    tpu.vector_store %arg9[%c0_166, %c0_167, %c0_168], %181 {strides = array<i32>} : memref<1x8x1xf32, #tpu.memory_space<vmem>>, vector<1x8x1xf32>,
    return
  }
  func.func @transform_0(%arg0: i32) -> (i32, i32, i32, i32) {
    %c0_i32 = arith.constant 0 : i32
    %c0_i32_0 = arith.constant 0 : i32
    %c0_i32_1 = arith.constant 0 : i32
    %c0_i32_2 = arith.constant 0 : i32
    return %c0_i32, %arg0, %c0_i32_0, %c0_i32_1 : i32, i32, i32, i32
  }
  func.func @transform_1(%arg0: i32) -> (i32, i32, i32) {
    %c0_i32 = arith.constant 0 : i32
    %c0_i32_0 = arith.constant 0 : i32
    %c0_i32_1 = arith.constant 0 : i32
    %c0_i32_2 = arith.constant 0 : i32
    return %c0_i32, %c0_i32_0, %c0_i32_1 : i32, i32, i32
  }
  func.func @transform_2(%arg0: i32) -> (i32, i32, i32) {
    %c0_i32 = arith.constant 0 : i32
    %c0_i32_0 = arith.constant 0 : i32
    %c0_i32_1 = arith.constant 0 : i32
    %c0_i32_2 = arith.constant 0 : i32
    return %c0_i32, %c0_i32_0, %c0_i32_1 : i32, i32, i32
  }
  func.func @transform_3(%arg0: i32) -> (i32, i32, i32) {
    %c0_i32 = arith.constant 0 : i32
    %c0_i32_0 = arith.constant 0 : i32
    %c0_i32_1 = arith.constant 0 : i32
    %c0_i32_2 = arith.constant 0 : i32
    return %c0_i32, %c0_i32_0, %c0_i32_1 : i32, i32, i32
  }
  func.func @transform_4(%arg0: i32) -> (i32, i32) {
    %c0_i32 = arith.constant 0 : i32
    %c0_i32_0 = arith.constant 0 : i32
    %c0_i32_1 = arith.constant 0 : i32
    return %c0_i32, %c0_i32_0 : i32, i32
  }
  func.func @transform_5(%arg0: i32) -> (i32, i32) {
    %c0_i32 = arith.constant 0 : i32
    %c0_i32_0 = arith.constant 0 : i32
    %c0_i32_1 = arith.constant 0 : i32
    return %c0_i32, %c0_i32_0 : i32, i32
  }
  func.func @transform_6(%arg0: i32) -> (i32, i32, i32) {
    %c0_i32 = arith.constant 0 : i32
    %c0_i32_0 = arith.constant 0 : i32
    %c0_i32_1 = arith.constant 0 : i32
    return %arg0, %c0_i32, %c0_i32_0 : i32, i32, i32
  }
  func.func @transform_7(%arg0: i32) -> (i32, i32, i32) {
    %c0_i32 = arith.constant 0 : i32
    %c0_i32_0 = arith.constant 0 : i32
    %c0_i32_1 = arith.constant 0 : i32
    return %arg0, %c0_i32, %c0_i32_0 : i32, i32, i32
  }
  func.func @transform_8(%arg0: i32) -> (i32, i32, i32) {
    %c0_i32 = arith.constant 0 : i32
    %c0_i32_0 = arith.constant 0 : i32
    %c0_i32_1 = arith.constant 0 : i32
    return %arg0, %c0_i32, %c0_i32_0 : i32, i32, i32
  }
}

module attributes {stable_mosaic.version = 11 : i64} {
  func.func @bn_act_kernel(%arg0: i32, %arg1: memref<1x8x100xf32, #tpu.memory_space<vmem>>, %arg2: memref<8x1xf32, #tpu.memory_space<vmem>>, %arg3: memref<8x1xf32, #tpu.memory_space<vmem>>, %arg4: memref<1x8x100xf32, #tpu.memory_space<vmem>>) attributes {dimension_semantics = [#tpu.dimension_semantics<parallel>], iteration_bounds = array<i64: 2>, scalar_prefetch = 0 : i64, scratch_operands = 0 : i64, tpu.core_type = #tpu.core_type<tc>, window_params = [{transform_indices = @transform_0, window_bounds = array<i64: 1, 8, 100>}, {pipeline_mode = #tpu.pipeline_mode<synchronous>, transform_indices = @transform_1, window_bounds = array<i64: 8, 1>}, {pipeline_mode = #tpu.pipeline_mode<synchronous>, transform_indices = @transform_2, window_bounds = array<i64: 8, 1>}, {transform_indices = @transform_3, window_bounds = array<i64: 1, 8, 100>}]} {
    %c0 = arith.constant 0 : index
    %c0_0 = arith.constant 0 : index
    %c0_1 = arith.constant 0 : index
    %0 = vector.load %arg1[%c0, %c0_0, %c0_1] : memref<1x8x100xf32, #tpu.memory_space<vmem>>, vector<1x8x100xf32>
    %1 = vector.shape_cast %0 : vector<1x8x100xf32> to vector<8x100xf32>
    %c0_2 = arith.constant 0 : index
    %c0_3 = arith.constant 0 : index
    %2 = vector.load %arg2[%c0_2, %c0_3] : memref<8x1xf32, #tpu.memory_space<vmem>>, vector<8x1xf32>
    %3 = vector.broadcast %2 : vector<8x1xf32> to vector<8x100xf32>
    %4 = arith.mulf %1, %3 : vector<8x100xf32>
    %c0_4 = arith.constant 0 : index
    %c0_5 = arith.constant 0 : index
    %5 = vector.load %arg3[%c0_4, %c0_5] : memref<8x1xf32, #tpu.memory_space<vmem>>, vector<8x1xf32>
    %6 = vector.broadcast %5 : vector<8x1xf32> to vector<8x100xf32>
    %7 = arith.addf %4, %6 : vector<8x100xf32>
    %cst = arith.constant 0.000000e+00 : f32
    %8 = vector.broadcast %cst : f32 to vector<8x100xf32>
    %9 = arith.cmpf ogt, %7, %8 : vector<8x100xf32>
    %cst_6 = arith.constant 1.000000e-01 : f32
    %10 = vector.broadcast %cst_6 : f32 to vector<8x100xf32>
    %11 = arith.mulf %10, %7 : vector<8x100xf32>
    %12 = arith.select %9, %7, %11 : vector<8x100xi1>, vector<8x100xf32>
    %c0_7 = arith.constant 0 : index
    %c0_8 = arith.constant 0 : index
    %c0_9 = arith.constant 0 : index
    %13 = vector.load %arg4[%c0_7, %c0_8, %c0_9] : memref<1x8x100xf32, #tpu.memory_space<vmem>>, vector<1x8x100xf32>
    %14 = vector.shape_cast %13 : vector<1x8x100xf32> to vector<8x100xf32>
    %15 = vector.shape_cast %12 : vector<8x100xf32> to vector<1x8x100xf32>
    tpu.vector_store %arg4[%c0_7, %c0_8, %c0_9], %15 {strides = array<i32>} : memref<1x8x100xf32, #tpu.memory_space<vmem>>, vector<1x8x100xf32>,
    return
  }
  func.func @transform_0(%arg0: i32) -> (i32, i32, i32) {
    %c0_i32 = arith.constant 0 : i32
    %c0_i32_0 = arith.constant 0 : i32
    %c0_i32_1 = arith.constant 0 : i32
    return %arg0, %c0_i32, %c0_i32_0 : i32, i32, i32
  }
  func.func @transform_1(%arg0: i32) -> (i32, i32) {
    %c0_i32 = arith.constant 0 : i32
    %c0_i32_0 = arith.constant 0 : i32
    %c0_i32_1 = arith.constant 0 : i32
    return %c0_i32, %c0_i32_0 : i32, i32
  }
  func.func @transform_2(%arg0: i32) -> (i32, i32) {
    %c0_i32 = arith.constant 0 : i32
    %c0_i32_0 = arith.constant 0 : i32
    %c0_i32_1 = arith.constant 0 : i32
    return %c0_i32, %c0_i32_0 : i32, i32
  }
  func.func @transform_3(%arg0: i32) -> (i32, i32, i32) {
    %c0_i32 = arith.constant 0 : i32
    %c0_i32_0 = arith.constant 0 : i32
    %c0_i32_1 = arith.constant 0 : i32
    return %arg0, %c0_i32, %c0_i32_0 : i32, i32, i32
  }
}

</mosaic_0001>

<bundles_post_ra>
// kernel: residual_cnn_forward.3
= control target key start
LH: loop header
LB: loop body
LE: loop exit
PB: predicated region body
PF: predicated region fallthrough
CT: control target
= control target key end

     0   :  { %s287_s12 = smov 0   ;;  %s310_s0 = inlined_call_operand.vmem [shape: f32[2,8,100], index: 0, kind: input, shape index: {}]   ;;  %s311_s1 = inlined_call_operand.vmem [shape: f32[8,1], index: 1, kind: input, shape index: {}]   ;;  %s312_s2 = inlined_call_operand.vmem [shape: f32[8,1], index: 2, kind: input, shape index: {}]   ;;  %s313_s3 = inlined_call_operand.vmem [shape: f32[2,8,100], index: 3, kind: output, shape index: {}]  }
   0x1 LB: > { %s239_s13 = sadd.s32 4294967295, %s264_s12   ;;  %p243_p0 = scmp.ge.s32.totalorder %s264_s12, 1  ;;  %s264_s12 = sphi %s287_s12, %s13_s12  }
   0x2   : > { %p136_p1 = scmp.lt.s32.totalorder %s264_s12, 3 }
   0x4   : > { %p137_p2 = pnand %p243_p0, %p136_p1 }
   0x5   : > { %v167_v0 = vld [vmem:[%s311_s1] sm:$0xff] (!%p137_p2)  ;;  %v266_v1 = vmov (!%p137_p2), 0   ;;  %p158_p3 = scmp.lt.s32.totalorder (!%p137_p2), %s239_s13, 1  ;;  %vm184_vm0 = vcmask (!%p137_p2), 818176  }
   0x6   : > { %140 = sbr.rel (%p137_p2) target bundleno = 145 (0x91), region = 32  ;;  %257 = vset.pattern.permute.xlu0 (!%p137_p2), %v266_v1  ;;  %v174_v2 = vld [vmem:[%s312_s2] sm:$0xff] (!%p137_p2) }
   0x7   : > { %170 = vperm.xlu0 (!%p137_p2), %257, %v167_v0  }
   0xb   : > { %177 = vperm.xlu0 (!%p137_p2), %257, %v174_v2  }
   0xd   : > { %s315_s13 = smov (!%p158_p3, %s239_s13), 1 }
   0xe   : > { %s244_s18 = sshll.u32 %s315_s13, 3 }
   0xf   : > { %s161_s21 = scalar_lea.vmem %s310_s0, %s244_s18  ;;  %s165_s24 = scalar_lea.vmem %s313_s3, %s244_s18 }
  0x10   : > { %v166_v4 = vld [vmem:[%s161_s21] sm:$0xff] }
  0x86   : > { %v171_v3 = vpop.permute.xlu0 %170 }
  0x87   : > { %v173_v5 = vmul.f32 %v171_v3, %v166_v4 }
  0x8a   : > { %v178_v6 = vpop.permute.xlu0 %177 }
  0x8b   : > { %v180_v7 = vadd.f32 %v178_v6, %v173_v5 }
  0x8d   : > { %vm181_vm1 = vcmp.gt.f32.partialorder %v180_v7, 0.0  ;;  %v182_v8 = vmul.f32 0.1, %v180_v7 }
  0x8f   : > { %v183_v9 = vsel %vm181_vm1, %v180_v7, %v182_v8 }
  0x90   : > { %185 = vst.msk [vmem:[%s165_s24] sm:$0xff] %vm184_vm0, %v183_v9 }
  0x91 PF: > { %s13_s12 = sadd.s32 1, %s264_s12  }
  0x92   : > { %p10_p4 = scmp.ge.s32.totalorder %s13_s12, 4  }
  0x94   :  { %12 = sbr.rel (!%p10_p4) target bundleno = 1 (0x1), region = 62 }

// kernel: residual_cnn_forward.2
= control target key start
LH: loop header
LB: loop body
LE: loop exit
PB: predicated region body
PF: predicated region fallthrough
CT: control target
= control target key end

     0   :  { %s2337_s27 = smov 0   ;;  %s2339_s28 = smov 0   ;;  %s2630_s0 = inlined_call_operand.vmem [shape: f32[4,2,4,111], index: 0, kind: input, shape index: {}]   ;;  %s2631_s1 = inlined_call_operand.vmem [shape: bf16[9,4,4], index: 1, kind: input, shape index: {}]   ;;  %s2632_s2 = inlined_call_operand.vmem [shape: bf16[9,8,4], index: 2, kind: input, shape index: {}]   ;;  %s2633_s3 = inlined_call_operand.vmem [shape: bf16[9,8,4], index: 3, kind: input, shape index: {}]   ;;  %s2634_s4 = inlined_call_operand.vmem [shape: f32[4,1], index: 4, kind: input, shape index: {}]   ;;  %s2635_s5 = inlined_call_operand.vmem [shape: f32[1,100], index: 5, kind: input, shape index: {}]   ;;  %s2636_s6 = inlined_call_operand.vmem [shape: f32[2,8,100], index: 6, kind: output, shape index: {0}]   ;;  %s2637_s7 = inlined_call_operand.vmem [shape: f32[2,8,1], index: 7, kind: output, shape index: {1}]   ;;  %s2638_s8 = inlined_call_operand.vmem [shape: f32[2,8,1], index: 8, kind: output, shape index: {2}]  }
   0x1   :  { %s2341_s29 = smov 0  }
   0x2 LB: > { %s1869_s30 = sadd.s32 4294967295, %s2278_s29   ;;  %s2354_s9 = sadd.s32 1, %s2278_s29   ;;  %s2278_s29 = sphi %s2341_s29, %s2641_s29   ;;  %s2274_s28 = sphi %s2339_s28, %s2640_s28   ;;  %s2270_s27 = sphi %s2337_s27, %s2639_s27  }
   0x3   : > { %s23_s10 = ssub.s32 %s2278_s29, %s2354_s9  ;;  %s26_s11 = sadd.s32 1, %s2274_s28 }
   0x4   : > { %p24_p0 = scmp.eq.s32.totalorder %s23_s10, 0  ;;  %p33_p1 = scmp.ne.s32.totalorder %s2274_s28, %s2270_s27 }
   0x5   : > { %p34_p2 = scmp.eq.s32.totalorder %s2278_s29, 0  ;;  %p1872_p4 = scmp.ge.s32.totalorder %s2278_s29, 2 }
   0x6   : > { %s2363_s12 = scalar_select %p24_p0, %s2274_s28, %s26_s11  }
   0x7   : > { %p35_p3 = por %p34_p2, %p33_p1  ;;  %257 = sbr.rel (%p1872_p4) target bundleno = 21 (0x15), region = 36 }
   0xe   : > { %260 = sbr.rel (!%p35_p3) target bundleno = 21 (0x15), region = 40  ;;  %s262_s13 = sand.u32 (%p35_p3), 1, %s2274_s28  }
   0xf   : > { %s1874_s14 = sshll.u32 (%p35_p3), %s2278_s29, 2  ;;  %s1873_s15 = sshll.u32 (%p35_p3), %s262_s13, 4 }
  0x10   : > { %s266_s18 = scalar_lea.vmem (%p35_p3), %s2630_s0, %s1874_s14  ;;  %s264_s19 = scalar_lea.vmem (%p35_p3), [#allocation3], %s1873_s15 }
  0x11   : > { %v282_v0 = vld [vmem:[%s266_s18] sm:$0xf] (%p35_p3)  ;;  %v284_v1 = vld [vmem:[%s266_s18 + $0x8] sm:$0xf] (%p35_p3)  ;;  %v286_v2 = vld [vmem:[%s266_s18 + $0x10] sm:$0xf] (%p35_p3) }
  0x12   : > { %283 = vst [vmem:[%s264_s19] sm:$0xf] (%p35_p3), %v282_v0  ;;  %285 = vst [vmem:[%s264_s19 + $0x4] sm:$0xf] (%p35_p3), %v284_v1  ;;  %v288_v3 = vld [vmem:[%s266_s18 + $0x18] sm:$0xf] (%p35_p3) }
  0x13   : > { %287 = vst [vmem:[%s264_s19 + $0x8] sm:$0xf] (%p35_p3), %v286_v2  ;;  %289 = vst [vmem:[%s264_s19 + $0xc] sm:$0xf] (%p35_p3), %v288_v3 }
  0x15 PF: > { %p1875_p5 = scmp.ge.s32.totalorder %s2278_s29, 1  ;;  %p319_p6 = scmp.lt.s32.totalorder %s2278_s29, 3 }
  0x17   : > { %p320_p7 = pnand %p1875_p5, %p319_p6 }
  0x18   : > { %s326_s20 = sand.u32 (!%p320_p7), 1, %s2270_s27   ;;  %v2280_v4 = vmov (!%p320_p7), 0.0   ;;  %vm2281_vm0 = vmmov (!%p320_p7), 0   ;;  %vm393_vm1 = vcmask (!%p320_p7), 1041408   ;;  %s2282_s23 = smov (!%p320_p7), 127   ;;  %vm389_vm2 = vcmask (!%p320_p7), 31744  }
  0x19   : > { %323 = sbr.rel (%p320_p7) target bundleno = 1133 (0x46d), region = 81  ;;  %s1876_s21 = sshll.u32 (!%p320_p7), %s326_s20, 4  ;;  %1991 = vmatprep.subr.bf16.mxu1 (!%p320_p7), %v2280_v4  ;;  %1993 = vmatprep.mubr.msk.bf16.mxu1 (!%p320_p7), %vm2281_vm0, %v2280_v4  ;;  %v1881_v12 = vld [vmem:[%s2631_s1 + $0x2] sm:$0x3] (!%p320_p7)  ;;  %v382_v16 = vld [vmem:[%s2631_s1] sm:$0x3] (!%p320_p7) }
  0x1a   : > { %2045 = vmatprep.subr.bf16.mxu0 (!%p320_p7), %v2280_v4  ;;  %2047 = vmatprep.mubr.msk.bf16.mxu0 (!%p320_p7), %vm2281_vm0, %v2280_v4  ;;  %s328_s22 = scalar_lea.vmem (!%p320_p7), [#allocation3], %s1876_s21  ;;  %s2283_s24 = smov (!%p320_p7), 118   ;;  %v1899_v18 = vld [vmem:[%s2632_s2 + $0x10] sm:$0xf] (!%p320_p7)  ;;  %v1884_v19 = vld [vmem:[%s2632_s2 + $0x4] sm:$0xf] (!%p320_p7) }
  0x1b   : > { %v380_v5 = vld [vmem:[%s328_s22] sm:$0xf] (!%p320_p7)  ;;  %v1891_v6 = vld [vmem:[%s328_s22 + $0x8] sm:$0xf] (!%p320_p7)  ;;  %v1880_v7 = vld [vmem:[%s328_s22 + $0x4] sm:$0xf] (!%p320_p7) }
  0x1c   : > { %v381_v8 = vpack.c.bf16 (!%p320_p7), %v380_v5, %v380_v5  ;;  %v386_v9 = vpack.c.bf16 (!%p320_p7), %v1880_v7, %v1880_v7  ;;  %v671_v10 = vpack.c.bf16 (!%p320_p7), %v1891_v6, %v1891_v6  ;;  %s2284_s27 = smov (!%p320_p7), 117   ;;  %v1896_v14 = vld [vmem:[%s328_s22 + $0xc] sm:$0xf] (!%p320_p7)  ;;  %v2285_v22 = vmov (!%p320_p7), 0   ;;  %v1887_v25 = vld [vmem:[%s2631_s1 + $0x4] sm:$0x3] (!%p320_p7) }
  0x1d   : > { %v769_v15 = vpack.c.bf16 (!%p320_p7), %v1896_v14, %v1896_v14  ;;  %v383_v20 = vld [vmem:[%s2632_s2] sm:$0xf] (!%p320_p7)  ;;  %2254 = vset.pattern.permute.xlu1 (!%p320_p7), %v2285_v22  ;;  %2255 = vset.pattern.permute.xlu0 (!%p320_p7), %v2285_v22  ;;  %v1903_v29 = vld [vmem:[%s2632_s2 + $0x14] sm:$0xf] (!%p320_p7)  ;;  %v1889_v31 = vld [vmem:[%s2632_s2 + $0x8] sm:$0xf] (!%p320_p7) }
  0x1e   : > { %574 = vrot.lane.b32.xlu0 (!%p320_p7), %v381_v8, %s2282_s23  ;;  %965 = vrot.lane.b32.xlu1 (!%p320_p7), %v381_v8, %s2283_s24  ;;  %v395_v11 = vsel (!%p320_p7), %vm393_vm1, %v386_v9, 0  ;;  %v441_v13 = vsel (!%p320_p7), %vm393_vm1, %v381_v8, 0  ;;  %v1255_v21 = vld [vmem:[%s2634_s4] sm:$0xf] (!%p320_p7)  ;;  %v678_v32 = vsel (!%p320_p7), %vm393_vm1, %v671_v10, 0  ;;  %vm1269_vm3 = vcmask (!%p320_p7), 994304  }
  0x1f   : > { %1992 = vmatpush3.bf16.msra.mxu1 (!%p320_p7), %v395_v11  ;;  %v2399_v17 = vsel (!%p320_p7), %vm393_vm1, %v769_v15, 0  ;;  %v1892_v33 = vld [vmem:[%s2631_s1 + $0x6] sm:$0x3] (!%p320_p7)  ;;  %v1907_v35 = vld [vmem:[%s2632_s2 + $0x18] sm:$0xf] (!%p320_p7)  ;;  %s2286_s19 = smov (!%p320_p7), 11  }
  0x20   : > { %1997 = vmatprep.subr.bf16.mxu1 %v2280_v4  ;;  %2046 = vmatpush3.bf16.msra.mxu0 %v2399_v17  ;;  %v1894_v37 = vld [vmem:[%s2632_s2 + $0xc] sm:$0xf]  ;;  %v1911_v39 = vld [vmem:[%s2632_s2 + $0x1c] sm:$0xf]  ;;  %v1897_v41 = vld [vmem:[%s2631_s1 + $0x8] sm:$0x3] }
  0x21   : > { %2057 = vmatprep.subr.bf16.mxu0 %v2280_v4  ;;  %v1901_v42 = vld [vmem:[%s2631_s1 + $0xa] sm:$0x3]  ;;  %v1905_v43 = vld [vmem:[%s2631_s1 + $0xc] sm:$0x3]  ;;  %v1909_v44 = vld [vmem:[%s2631_s1 + $0xe] sm:$0x3] }
  0x22   : > { %868 = vrot.lane.b32.xlu0 %v671_v10, %s2282_s23  ;;  %1063 = vrot.lane.b32.xlu1 %v386_v9, %s2283_s24  ;;  %v1913_v45 = vld [vmem:[%s2631_s1 + $0x10] sm:$0x3]  ;;  %1270 = vst.msk [vmem:[#allocation2] sm:$0xf] %vm1269_vm3, %v2280_v4  ;;  %vm1275_vm4 = vcmask 904280   ;;  %s2287_s22 = smov 126  }
  0x23   : > { %1994 = vmatmul.mubr.msk.bf16.vlgmr.msra.gmra.mrb[0].mxu1 %vm389_vm2, %v1881_v12  ;;  %2048 = vmatmul.mubr.msk.bf16.vlgmr.msra.gmra.mrb[0].mxu0 %vm389_vm2, %v1899_v18  ;;  %s2288_s25 = smov 108   ;;  %s2289_s26 = smov 116   ;;  %vm1735_vm5 = vcmask 818176   ;;  %vm1741_vm6 = vcmask 7168  }
  0x24   : > { %1998 = vmatpush3.bf16.msra.mxu1 %v441_v13  ;;  %1999 = vmatprep.mubr.msk.bf16.mxu1 %vm2281_vm0, %v2280_v4  ;;  %s2290_s10 = smov 106   ;;  %s2291_s11 = smov 107  }
  0x25   : > { %2003 = vmatprep.subr.bf16.mxu1 %v2280_v4  ;;  %2059 = vmatprep.mubr.msk.bf16.mxu0 %vm2281_vm0, %v2280_v4  ;;  %p366_p8 = scmp.lt.s32.totalorder %s1869_s30, 1 }
  0x26   : > { %1160 = vrot.lane.b32.xlu0 %v381_v8, %s2284_s27  ;;  %1258 = vperm.xlu1 %2254, %v1255_v21  }
  0x27   : > { %s2643_s30 = smov (!%p366_p8, %s1869_s30), 1 }
  0x28   : > { %s1877_s14 = sshll.u32 %s2643_s30, 3 }
  0x29   : > { %s373_s15 = scalar_lea.vmem %s2637_s7, %s1877_s14  ;;  %s377_s18 = scalar_lea.vmem %s2638_s8, %s1877_s14 }
  0x2b   : > { %2000 = vmatmul.mubr.msk.bf16.vlgmr.msra.gmra.mrb[4].mxu1 %vm389_vm2, %v382_v16 }
  0x2c   : > { %2004 = vmatpush3.bf16.msra.mxu1 %v395_v11  ;;  %2005 = vmatprep.mubr.msk.bf16.mxu1 %vm2281_vm0, %v2280_v4 }
  0x2d   : > { %2009 = vmatprep.subr.bf16.mxu1 %v2280_v4 }
  0x33   : > { %2006 = vmatmul.mubr.msk.bf16.vlgmr.msra.gmra.mrb[8].mxu1 %vm389_vm2, %v1884_v19 }
  0x34   : > { %2010 = vmatpush3.bf16.msra.mxu1 %v441_v13  ;;  %2011 = vmatprep.mubr.msk.bf16.mxu1 %vm2281_vm0, %v2280_v4 }
  0x35   : > { %2015 = vmatprep.subr.bf16.mxu1 %v2280_v4 }
  0x3f   : > { %2012 = vmatmul.mubr.msk.bf16.vlgmr.msra.gmra.mrb[8].mxu1 %vm389_vm2, %v383_v20 }
  0x40   : > { %2017 = vmatprep.mubr.msk.bf16.mxu1 %vm2281_vm0, %v2280_v4 }
  0x90   : > { %v575_v23 = vpop.permute.xlu0 %574  ;;  %v966_v28 = vpop.permute.xlu1 %965 }
  0x91   : > { %v580_v24 = vsel %vm393_vm1, %v575_v23, 0  ;;  %v971_v30 = vsel %vm393_vm1, %v966_v28, 0 }
  0x92   : > { %2016 = vmatpush3.bf16.msra.mxu1 %v580_v24 }
  0x93   : > { %2021 = vmatprep.subr.bf16.mxu1 %v2280_v4 }
  0x94   : > { %v869_v26 = vpop.permute.xlu0 %868  ;;  %v1064_v34 = vpop.permute.xlu1 %1063 }
  0x95   : > { %2018 = vmatmul.mubr.msk.bf16.vlgmr.msra.gmra.mrb[12].mxu1 %vm389_vm2, %v1887_v25  ;;  %v874_v27 = vsel %vm393_vm1, %v869_v26, 0  ;;  %v1069_v36 = vsel %vm393_vm1, %v1064_v34, 0 }
  0x96   : > { %2022 = vmatpush3.bf16.msra.mxu1 %v580_v24  ;;  %2023 = vmatprep.mubr.msk.bf16.mxu1 %vm2281_vm0, %v2280_v4 }
  0x97   : > { %2027 = vmatprep.subr.bf16.mxu1 %v2280_v4  ;;  %2058 = vmatpush3.bf16.msra.mxu0 %v874_v27 }
  0x98   : > { %2069 = vmatprep.subr.bf16.mxu0 %v2280_v4  ;;  %v1161_v38 = vpop.permute.xlu0 %1160 }
  0x99   : > { %v1166_v40 = vsel %vm393_vm1, %v1161_v38, 0 }
  0x9a   : > { %2060 = vmatmul.mubr.msk.bf16.vlgmr.msra.gmra.mrb[0].mxu0 %vm389_vm2, %v1903_v29 }
  0x9b   : > { %2070 = vmatpush3.bf16.msra.mxu0 %v971_v30  ;;  %2071 = vmatprep.mubr.msk.bf16.mxu0 %vm2281_vm0, %v2280_v4 }
  0x9c   : > { %2081 = vmatprep.subr.bf16.mxu0 %v2280_v4 }
  0x9d   : > { %2024 = vmatmul.mubr.msk.bf16.vlgmr.msra.gmra.mrb[8].mxu1 %vm389_vm2, %v1889_v31 }
  0x9e   : > { %2028 = vmatpush3.bf16.msra.mxu1 %v678_v32  ;;  %2029 = vmatprep.mubr.msk.bf16.mxu1 %vm2281_vm0, %v2280_v4 }
  0x9f   : > { %2033 = vmatprep.subr.bf16.mxu1 %v2280_v4 }
  0xa5   : > { %2030 = vmatmul.mubr.msk.bf16.vlgmr.msra.gmra.mrb[16].mxu1 %vm389_vm2, %v1892_v33 }
  0xa6   : > { %2034 = vmatpush3.bf16.msra.mxu1 %v678_v32  ;;  %2035 = vmatprep.mubr.msk.bf16.mxu1 %vm2281_vm0, %v2280_v4 }
  0xa7   : > { %2039 = vmatprep.subr.bf16.mxu1 %v2280_v4  ;;  %2072 = vmatmul.mubr.msk.bf16.vlgmr.msra.gmra.mrb[0].mxu0 %vm389_vm2, %v1907_v35  ;;  %v1915_v35 = vld [vmem:[%s2632_s2 + $0x20] sm:$0xf] }
  0xa8   : > { %2082 = vmatpush3.bf16.msra.mxu0 %v1069_v36  ;;  %2083 = vmatprep.mubr.msk.bf16.mxu0 %vm2281_vm0, %v2280_v4 }
  0xa9   : > { %2093 = vmatprep.subr.bf16.mxu0 %v2280_v4 }
  0xad   : > { %2036 = vmatmul.mubr.msk.bf16.vlgmr.msra.gmra.mrb[8].mxu1 %vm389_vm2, %v1894_v37 }
  0xae   : > { %2040 = vmatpush3.bf16.msra.mxu1 %v2399_v17  ;;  %2041 = vmatprep.mubr.msk.bf16.mxu1 %vm2281_vm0, %v2280_v4 }
  0xaf   : > { %2051 = vmatprep.subr.bf16.mxu1 %v2280_v4 }
  0xb3   : > { %2084 = vmatmul.mubr.msk.bf16.vlgmr.msra.gmra.mrb[0].mxu0 %vm389_vm2, %v1911_v39 }
  0xb4   : > { %2094 = vmatpush3.bf16.msra.mxu0 %v1166_v40  ;;  %2095 = vmatprep.mubr.msk.bf16.mxu0 %vm2281_vm0, %v2280_v4 }
  0xb5   : > { %2042 = vmatmul.mubr.msk.bf16.vlgmr.msra.gmra.mrb[20].mxu1 %vm389_vm2, %v1897_v41  ;;  %2099 = vmatprep.subr.bf16.mxu0 %v2280_v4  ;;  %v1918_v41 = vld [vmem:[%s2633_s3 + $0x4] sm:$0xf] }
  0xb6   : > { %2052 = vmatpush3.bf16.msra.mxu1 %v874_v27  ;;  %2053 = vmatprep.mubr.msk.bf16.mxu1 %vm2281_vm0, %v2280_v4  ;;  %v1259_v27 = vpop.permute.xlu1 %1258 }
  0xb7   : > { %2063 = vmatprep.subr.bf16.mxu1 %v2280_v4 }
  0xbd   : > { %2054 = vmatmul.mubr.msk.bf16.vlgmr.msra.gmra.mrb[24].mxu1 %vm389_vm2, %v1901_v42 }
  0xbe   : > { %2064 = vmatpush3.bf16.msra.mxu1 %v971_v30  ;;  %2065 = vmatprep.mubr.msk.bf16.mxu1 %vm2281_vm0, %v2280_v4  ;;  %v2524_v30 = vld [vmem:[%s2635_s5] ss:$0 sm:$0xff] }
  0xbf   : > { %2075 = vmatprep.subr.bf16.mxu1 %v2280_v4  ;;  %2096 = vmatmul.mubr.msk.bf16.vlgmr.msra.gmra.mrb[0].mxu0 %vm389_vm2, %v1915_v35 }
  0xc0   : > { %2101 = vmatprep.mubr.msk.bf16.mxu0 %vm2281_vm0, %v2280_v4 }
  0xc5   : > { %2066 = vmatmul.mubr.msk.bf16.vlgmr.msra.gmra.mrb[28].mxu1 %vm389_vm2, %v1905_v43 }
  0xc6   : > { %2076 = vmatpush3.bf16.msra.mxu1 %v1069_v36  ;;  %2077 = vmatprep.mubr.msk.bf16.mxu1 %vm2281_vm0, %v2280_v4 }
  0xc7   : > { %2087 = vmatprep.subr.bf16.mxu1 %v2280_v4 }
  0xcd   : > { %2078 = vmatmul.mubr.msk.bf16.vlgmr.msra.gmra.mrb[32].mxu1 %vm389_vm2, %v1909_v44  ;;  %v1279_v44 = vld [vmem:[%s2633_s3] sm:$0xf] }
  0xce   : > { %2088 = vmatpush3.bf16.msra.mxu1 %v1166_v40  ;;  %2089 = vmatprep.mubr.msk.bf16.mxu1 %vm2281_vm0, %v2280_v4 }
  0xd5   : > { %2090 = vmatmul.mubr.msk.bf16.vlgmr.msra.gmra.mrb[36].mxu1 %vm389_vm2, %v1913_v45 }
  0xf6   : > { %v431_v46 = vpop.f32.mrb[0].mxu1 }
  0xf7   : > { %v1995_v47 = vpop.f32.mrb[1].mxu1 }
  0xf8   : > { %v434_v48 = vpop.f32.mrb[2].mxu1  ;;  %v1921_v47 = vld [vmem:[%s2633_s3 + $0x8] sm:$0xf] }
  0xf9   : > { %v1996_v49 = vpop.f32.mrb[3].mxu1 }
  0xfe   : > { %v477_v50 = vpop.f32.mrb[4].mxu1 }
  0xff   : > { %v478_v51 = vadd.f32 %v477_v50, %v431_v46  ;;  %v2001_v52 = vpop.f32.mrb[5].mxu1  ;;  %v1923_v50 = vld [vmem:[%s2633_s3 + $0xc] sm:$0xf] }
 0x100   : > { %v480_v53 = vpop.f32.mrb[6].mxu1 }
 0x101   : > { %v2002_v54 = vpop.f32.mrb[7].mxu1  ;;  %v1925_v53 = vld [vmem:[%s2633_s3 + $0x10] sm:$0xf] }
 0x168   : > { %v616_v55 = vpop.f32.mrb[12].mxu1 }
 0x169   : > { %v622_v56 = vadd.f32 %v616_v55, %v478_v51  ;;  %v2019_v57 = vpop.f32.mrb[13].mxu1 }
 0x16a   : > { %v619_v58 = vpop.f32.mrb[14].mxu1 }
 0x16b   : > { %v2020_v59 = vpop.f32.mrb[15].mxu1 }
 0x16c   : > { %v1929_v59 = vld [vmem:[%s2633_s3 + $0x18] sm:$0xf] }
 0x178   : > { %v714_v60 = vpop.f32.mrb[16].mxu1 }
 0x179   : > { %v720_v61 = vadd.f32 %v714_v60, %v622_v56  ;;  %v2031_v62 = vpop.f32.mrb[17].mxu1  ;;  %v1927_v56 = vld [vmem:[%s2633_s3 + $0x14] sm:$0xf] }
 0x17a   : > { %v717_v63 = vpop.f32.mrb[18].mxu1  ;;  %v1931_v62 = vld [vmem:[%s2633_s3 + $0x1c] sm:$0xf] }
 0x17b   : > { %v2032_v0 = vpop.f32.mrb[19].mxu1 }
 0x17c   : > { %v1933_v0 = vld [vmem:[%s2633_s3 + $0x20] sm:$0xf] }
 0x180   : > { %v2519_v1 = vpop.f32.mrb[8].mxu1 }
 0x181   : > { %v2037_v2 = vpop.f32.mrb[9].mxu1 }
 0x182   : > { %v763_v3 = vpop.f32.mrb[10].mxu1 }
 0x183   : > { %v2038_v5 = vpop.f32.mrb[11].mxu1 }
 0x188   : > { %v812_v6 = vpop.f32.mrb[20].mxu1 }
 0x189   : > { %v818_v7 = vadd.f32 %v812_v6, %v720_v61  ;;  %v2043_v8 = vpop.f32.mrb[21].mxu1 }
 0x18a   : > { %v815_v9 = vpop.f32.mrb[22].mxu1 }
 0x18b   : > { %v2044_v10 = vpop.f32.mrb[23].mxu1 }
 0x190   : > { %v910_v11 = vpop.f32.mrb[24].mxu1 }
 0x191   : > { %v916_v12 = vadd.f32 %v910_v11, %v818_v7  ;;  %v2055_v13 = vpop.f32.mrb[25].mxu1 }
 0x192   : > { %v913_v14 = vpop.f32.mrb[26].mxu1 }
 0x193   : > { %v2056_v15 = vpop.f32.mrb[27].mxu1 }
 0x198   : > { %v1007_v16 = vpop.f32.mrb[28].mxu1 }
 0x199   : > { %v1013_v17 = vadd.f32 %v1007_v16, %v916_v12  ;;  %v2067_v18 = vpop.f32.mrb[29].mxu1 }
 0x19a   : > { %v1010_v19 = vpop.f32.mrb[30].mxu1 }
 0x19b   : > { %v2068_v20 = vpop.f32.mrb[31].mxu1 }
 0x1a0   : > { %v1105_v21 = vpop.f32.mrb[32].mxu1 }
 0x1a1   : > { %v1111_v22 = vadd.f32 %v1105_v21, %v1013_v17  ;;  %v2079_v23 = vpop.f32.mrb[33].mxu1 }
 0x1a2   : > { %v1108_v24 = vpop.f32.mrb[34].mxu1 }
 0x1a3   : > { %v2080_v25 = vpop.f32.mrb[35].mxu1 }
 0x1a8   : > { %v1202_v26 = vpop.f32.mrb[36].mxu1 }
 0x1a9   : > { %v1208_v28 = vadd.f32 %v1202_v26, %v1111_v22  ;;  %v2091_v29 = vpop.f32.mrb[37].mxu1 }
 0x1aa   : > { %v1205_v31 = vpop.f32.mrb[38].mxu1 }
 0x1ab   : > { %v1261_v32 = vadd.f32 %v1259_v27, %v1208_v28  ;;  %v2092_v33 = vpop.f32.mrb[39].mxu1 }
 0x1ad   : > { %v1268_v34 = vmul.f32 %v2524_v30, %v1261_v32 }
 0x1af   : > { %1272 = vrot.lane.b32.xlu0 %v1268_v34, %s2286_s19 }
 0x221   : > { %v1273_v36 = vpop.permute.xlu0 %1272 }
 0x222   : > { %1276 = vst.msk [vmem:[#allocation2] sm:$0xf] %vm1275_vm4, %v1273_v36 }
 0x229   : > { %v1277_v37 = vld [vmem:[#allocation2] sm:$0xf] }
 0x22a   : > { %v1278_v38 = vpack.c.bf16 %v1277_v37, %v1277_v37 }
 0x22c   : > { %1379 = vrot.lane.b32.xlu0 %v1278_v38, %s2287_s22  ;;  %1283 = vrot.lane.b32.xlu1 %v1278_v38, %s2282_s23  ;;  %v1335_v42 = vsel %vm393_vm1, %v1278_v38, 0 }
 0x230   : > { %1481 = vrot.lane.b32.xlu0 %v1278_v38, %s2284_s27  ;;  %1430 = vrot.lane.b32.xlu1 %v1278_v38, %s2283_s24  ;;  %s369_s27 = scalar_lea.vmem %s2636_s6, %s1877_s14 }
 0x234   : > { %1583 = vrot.lane.b32.xlu0 %v1278_v38, %s2288_s25  ;;  %1532 = vrot.lane.b32.xlu1 %v1278_v38, %s2289_s26 }
 0x238   : > { %1685 = vrot.lane.b32.xlu0 %v1278_v38, %s2290_s10  ;;  %1634 = vrot.lane.b32.xlu1 %v1278_v38, %s2291_s11 }
 0x29e   : > { %v1284_v39 = vpop.permute.xlu1 %1283  ;;  %v1380_v43 = vpop.permute.xlu0 %1379 }
 0x29f   : > { %v1289_v40 = vsel %vm393_vm1, %v1284_v39, 0  ;;  %v1385_v45 = vsel %vm393_vm1, %v1380_v43, 0 }
 0x2a0   : > { %2100 = vmatpush3.bf16.msra.mxu0 %v1289_v40 }
 0x2a1   : > { %2105 = vmatprep.subr.bf16.mxu0 %v2280_v4 }
 0x2a2   : > { %v1431_v46 = vpop.permute.xlu1 %1430  ;;  %v1482_v49 = vpop.permute.xlu0 %1481 }
 0x2a3   : > { %2102 = vmatmul.mubr.msk.bf16.vlgmr.msra.gmra.mrb[0].mxu0 %vm389_vm2, %v1918_v41  ;;  %v1436_v48 = vsel %vm393_vm1, %v1431_v46, 0  ;;  %v1487_v51 = vsel %vm393_vm1, %v1482_v49, 0 }
 0x2a4   : > { %2106 = vmatpush3.bf16.msra.mxu0 %v1335_v42  ;;  %2107 = vmatprep.mubr.msk.bf16.mxu0 %vm2281_vm0, %v2280_v4 }
 0x2a5   : > { %2111 = vmatprep.subr.bf16.mxu0 %v2280_v4 }
 0x2a6   : > { %v1533_v52 = vpop.permute.xlu1 %1532  ;;  %v1584_v55 = vpop.permute.xlu0 %1583 }
 0x2a7   : > { %v1538_v54 = vsel %vm393_vm1, %v1533_v52, 0  ;;  %v1589_v57 = vsel %vm393_vm1, %v1584_v55, 0 }
 0x2aa   : > { %v1635_v58 = vpop.permute.xlu1 %1634  ;;  %v1686_v61 = vpop.permute.xlu0 %1685 }
 0x2ab   : > { %v1640_v60 = vsel %vm393_vm1, %v1635_v58, 0  ;;  %v1691_v63 = vsel %vm393_vm1, %v1686_v61, 0 }
 0x2af   : > { %2108 = vmatmul.mubr.msk.bf16.vlgmr.msra.gmra.mrb[0].mxu0 %vm389_vm2, %v1279_v44 }
 0x2b0   : > { %2112 = vmatpush3.bf16.msra.mxu0 %v1385_v45  ;;  %2113 = vmatprep.mubr.msk.bf16.mxu0 %vm2281_vm0, %v2280_v4 }
 0x2b1   : > { %2117 = vmatprep.subr.bf16.mxu0 %v2280_v4 }
 0x2bb   : > { %2114 = vmatmul.mubr.msk.bf16.vlgmr.msra.gmra.mrb[0].mxu0 %vm389_vm2, %v1921_v47 }
 0x2bc   : > { %2118 = vmatpush3.bf16.msra.mxu0 %v1436_v48  ;;  %2119 = vmatprep.mubr.msk.bf16.mxu0 %vm2281_vm0, %v2280_v4 }
 0x2bd   : > { %2123 = vmatprep.subr.bf16.mxu0 %v2280_v4 }
 0x2c7   : > { %2120 = vmatmul.mubr.msk.bf16.vlgmr.msra.gmra.mrb[0].mxu0 %vm389_vm2, %v1923_v50 }
 0x2c8   : > { %2124 = vmatpush3.bf16.msra.mxu0 %v1487_v51  ;;  %2125 = vmatprep.mubr.msk.bf16.mxu0 %vm2281_vm0, %v2280_v4 }
 0x2c9   : > { %2129 = vmatprep.subr.bf16.mxu0 %v2280_v4 }
 0x2d3   : > { %2126 = vmatmul.mubr.msk.bf16.vlgmr.msra.gmra.mrb[0].mxu0 %vm389_vm2, %v1925_v53 }
 0x2d4   : > { %2130 = vmatpush3.bf16.msra.mxu0 %v1538_v54  ;;  %2131 = vmatprep.mubr.msk.bf16.mxu0 %vm2281_vm0, %v2280_v4 }
 0x2d5   : > { %2135 = vmatprep.subr.bf16.mxu0 %v2280_v4 }
 0x2df   : > { %2132 = vmatmul.mubr.msk.bf16.vlgmr.msra.gmra.mrb[0].mxu0 %vm389_vm2, %v1927_v56 }
 0x2e0   : > { %2136 = vmatpush3.bf16.msra.mxu0 %v1589_v57  ;;  %2137 = vmatprep.mubr.msk.bf16.mxu0 %vm2281_vm0, %v2280_v4 }
 0x2e1   : > { %2141 = vmatprep.subr.bf16.mxu0 %v2280_v4 }
 0x2eb   : > { %2138 = vmatmul.mubr.msk.bf16.vlgmr.msra.gmra.mrb[0].mxu0 %vm389_vm2, %v1929_v59 }
 0x2ec   : > { %2142 = vmatpush3.bf16.msra.mxu0 %v1640_v60  ;;  %2143 = vmatprep.mubr.msk.bf16.mxu0 %vm2281_vm0, %v2280_v4 }
 0x2ed   : > { %2147 = vmatprep.subr.bf16.mxu0 %v2280_v4 }
 0x2f7   : > { %2144 = vmatmul.mubr.msk.bf16.vlgmr.msra.gmra.mrb[0].mxu0 %vm389_vm2, %v1931_v62 }
 0x2f8   : > { %2148 = vmatpush3.bf16.msra.mxu0 %v1691_v63  ;;  %2149 = vmatprep.mubr.msk.bf16.mxu0 %vm2281_vm0, %v2280_v4 }
 0x303   : > { %2150 = vmatmul.mubr.msk.bf16.vlgmr.msra.gmra.mrb[0].mxu0 %vm389_vm2, %v1933_v0 }
 0x3d6   : > { %v1727_v2 = vpop.f32.mrb[0].mxu0 }
 0x3d7   : > { %v2153_v3 = vadd.f32 %v1727_v2, %v2519_v1  ;;  %v2151_v4 = vpop.f32.mrb[1].mxu0 }
 0x3d8   : > { %v1730_v5 = vpop.f32.mrb[2].mxu0 }
 0x3d9   : > { %v2152_v6 = vpop.f32.mrb[3].mxu0  ;;  %v1737_v7 = vmul.f32 %v2153_v3, %v2524_v30  ;;  %1736 = vst.msk [vmem:[%s369_s27] sm:$0xff] %vm1735_vm5, %v2153_v3 }
 0x3db   : > { %v1738_v8 = vsel %vm1735_vm5, %v1737_v7, 0.0  ;;  %v1743_v9 = vmul.f32 %v1737_v7, %v1737_v7 }
 0x3dc   : > { %1739 = vadd.xlane.f32.xlu1 %v1738_v8 }
 0x3dd   : > { %v1744_v10 = vsel %vm1735_vm5, %v1743_v9, 0.0 }
 0x3de   : > { %1745 = vadd.xlane.f32.xlu0 %v1744_v10 }
 0x469   : > { %v1740_v11 = vpop.xlane.xlu1 %1739 }
 0x46a   : > { %1742 = vst.msk [vmem:[%s373_s15] sm:$0xff] %vm1741_vm6, %v1740_v11 }
 0x46b   : > { %v1746_v1 = vpop.xlane.xlu0 %1745 }
 0x46c   : > { %1747 = vst.msk [vmem:[%s377_s18] sm:$0xff] %vm1741_vm6, %v1746_v1 }
 0x46d PF: > { %p16_p9 = scmp.ge.s32.totalorder %s2354_s9, 4   ;;  %s2639_s27 = smov %s2274_s28 }
 0x46e   : > { %s2640_s28 = smov %s2363_s12  ;;  %s2641_s29 = smov %s2354_s9 }
 0x46f   :  { %18 = sbr.rel (!%p16_p9) target bundleno = 2 (0x2), region = 171 }

</bundles_post_ra>
